<compile_context>
chip_gen: v7x
topology: tpu7x:2x2x1
jax: 0.10.0
libtpu: 0.0.40
codegen_flags: <defaults>
</compile_context>

<pallas_src>
import functools
import math

import jax
import jax.numpy as jnp
from jax import lax
from jax.experimental import pallas as pl
from jax.experimental.pallas import tpu as pltpu


# ---------------------------------------------------------------------------
# Generation-aware sizing (v5e/v6e: 128 MiB VMEM, v7x: 64 MiB per TensorCore)
# ---------------------------------------------------------------------------
@functools.lru_cache(maxsize=None)
def _vmem_capacity_bytes():
    try:
        return int(pltpu.get_tpu_info().vmem_capacity_bytes)
    except Exception:
        return 64 << 20  # conservative fallback (v7x per-TensorCore VMEM)


def _vmem_limit_bytes():
    # Raise the scoped-VMEM limit above the small defaults, leave headroom below physical.
    return min(int(_vmem_capacity_bytes() * 0.7), 96 << 20)


def _default_tile_m():
    # Projection row tile: bigger on 128 MiB parts (v5e/v6e), smaller on v7x.
    return 512 if _vmem_capacity_bytes() >= (96 << 20) else 256


def _default_tile_q():
    return 256


def _default_tile_k():
    return 1024 if _vmem_capacity_bytes() >= (96 << 20) else 512


def _mosaic_params(*dims):
    return pltpu.CompilerParams(dimension_semantics=dims,
                                vmem_limit_bytes=_vmem_limit_bytes())


# ---------------------------------------------------------------------------
# Parameter preparation: transpose PyTorch [out, in] weights ONCE, cast to bf16,
# build the packed QKV weight for the self-attention fast path.
# ---------------------------------------------------------------------------
def prepare_mha_params(params, compute_dtype=jnp.bfloat16):
    wq_t = params["W_Q"].T.astype(compute_dtype)            # [2*d_model, d_model]
    wk_t = params["W_K"].T.astype(compute_dtype)
    wv_t = params["W_V"].T.astype(compute_dtype)
    return {
        "wq_t": wq_t,
        "wk_t": wk_t,
        "wv_t": wv_t,
        "w_qkv_t": jnp.concatenate([wq_t, wk_t, wv_t], axis=1),  # [2*d_model, 3*d_model]
        "wo_t": params["fc"].T.astype(compute_dtype),            # [d_model, d_model]
        "compute_dtype": compute_dtype,
    }


# ---------------------------------------------------------------------------
# Kernel 1a: packed QKV projection (self-attention: one input, one wide matmul)
# ---------------------------------------------------------------------------
def _qkv_packed_kernel(x_ref, w_ref, q_ref, k_ref, v_ref):
    d = q_ref.shape[-1]
    qkv = jnp.dot(x_ref[...], w_ref[...], preferred_element_type=jnp.float32)
    q_ref[...] = qkv[:, :d].astype(q_ref.dtype)
    k_ref[...] = qkv[:, d:2 * d].astype(k_ref.dtype)
    v_ref[...] = qkv[:, 2 * d:].astype(v_ref.dtype)


def qkv_project_packed(x, w_qkv_t, d_model, tile_m=None):
    B, L, Din = x.shape
    M = B * L
    dt = w_qkv_t.dtype
    tm = min(tile_m or _default_tile_m(), M)
    outs = pl.pallas_call(
        _qkv_packed_kernel,
        out_shape=tuple(jax.ShapeDtypeStruct((M, d_model), dt) for _ in range(3)),
        grid=(pl.cdiv(M, tm),),
        in_specs=[pl.BlockSpec((tm, Din), lambda i: (i, 0)),
                  pl.BlockSpec((Din, 3 * d_model), lambda i: (0, 0))],
        out_specs=tuple(pl.BlockSpec((tm, d_model), lambda i: (i, 0)) for _ in range(3)),
        compiler_params=_mosaic_params("parallel"),
    )(x.reshape(M, Din).astype(dt), w_qkv_t)
    return tuple(o.reshape(B, L, d_model) for o in outs)


# ---------------------------------------------------------------------------
# Kernel 1b: fused QKV projection for distinct Q/K/V inputs (one launch, 3 matmuls)
# ---------------------------------------------------------------------------
def _qkv_kernel(xq_ref, xk_ref, xv_ref, wq_ref, wk_ref, wv_ref, q_ref, k_ref, v_ref):
    q_ref[...] = jnp.dot(xq_ref[...], wq_ref[...],
                         preferred_element_type=jnp.float32).astype(q_ref.dtype)
    k_ref[...] = jnp.dot(xk_ref[...], wk_ref[...],
                         preferred_element_type=jnp.float32).astype(k_ref.dtype)
    v_ref[...] = jnp.dot(xv_ref[...], wv_ref[...],
                         preferred_element_type=jnp.float32).astype(v_ref.dtype)


def qkv_project_fused(xq, xk, xv, wq_t, wk_t, wv_t, tile_m=None):
    B, L, Din = xq.shape
    M = B * L
    d_model = wq_t.shape[1]
    dt = wq_t.dtype
    tm = min(tile_m or _default_tile_m(), M)
    outs = pl.pallas_call(
        _qkv_kernel,
        out_shape=tuple(jax.ShapeDtypeStruct((M, d_model), dt) for _ in range(3)),
        grid=(pl.cdiv(M, tm),),
        in_specs=[pl.BlockSpec((tm, Din), lambda i: (i, 0))] * 3
                 + [pl.BlockSpec((Din, d_model), lambda i: (0, 0))] * 3,
        out_specs=tuple(pl.BlockSpec((tm, d_model), lambda i: (i, 0)) for _ in range(3)),
        compiler_params=_mosaic_params("parallel"),
    )(xq.reshape(M, Din).astype(dt), xk.reshape(M, Din).astype(dt),
      xv.reshape(M, Din).astype(dt), wq_t, wk_t, wv_t)
    return tuple(o.reshape(B, L, d_model) for o in outs)


# ---------------------------------------------------------------------------
# Kernel 1c: generic M-tiled linear (fallback when len_q != len_k)
# ---------------------------------------------------------------------------
def _linear_kernel(x_ref, w_ref, o_ref):
    o_ref[...] = jnp.dot(x_ref[...], w_ref[...],
                         preferred_element_type=jnp.float32).astype(o_ref.dtype)


def linear_tiled(x, w_t, tile_m=None):
    B, L, Din = x.shape
    Dout = w_t.shape[1]
    dt = w_t.dtype
    M = B * L
    tm = min(tile_m or _default_tile_m(), M)
    out = pl.pallas_call(
        _linear_kernel,
        out_shape=jax.ShapeDtypeStruct((M, Dout), dt),
        grid=(pl.cdiv(M, tm),),
        in_specs=[pl.BlockSpec((tm, Din), lambda i: (i, 0)),
                  pl.BlockSpec((Din, Dout), lambda i: (0, 0))],
        out_specs=pl.BlockSpec((tm, Dout), lambda i: (i, 0)),
        compiler_params=_mosaic_params("parallel"),
    )(x.reshape(M, Din).astype(dt), w_t)
    return out.reshape(B, L, Dout)


# ---------------------------------------------------------------------------
# Mask handling: None, shared [Lq, Lk], or [B|1, H|1, Lq, Lk]
# ---------------------------------------------------------------------------
def _check_mask(mask, B, n_heads):
    if mask is None:
        return 0, 1, False
    if mask.ndim == 2:
        return 2, 1, False
    if mask.ndim == 4:
        mb, mh = mask.shape[0], mask.shape[1]
        if mh not in (1, n_heads):
            raise ValueError(f"mask head dim must be 1 or n_heads={n_heads}, got {mh}")
        if mb not in (1, B):
            raise ValueError(f"mask batch dim must be 1 or batch={B}, got {mb}")
        return 4, mh, mb == B
    raise ValueError("mask must be None, [Lq, Lk], or [B|1, H|1, Lq, Lk]")


# ---------------------------------------------------------------------------
# Kernel 2a: full attention + output projection (module semantics: emits attn).
# grid=(B, Lq-tiles); per step all heads of one (batch, q-tile) are processed.
# ---------------------------------------------------------------------------
def _attn_full_kernel(*refs, n_heads, d_head, scale, mask_ndim, mask_heads):
    idx = 0
    q_ref = refs[idx]; idx += 1
    k_ref = refs[idx]; idx += 1
    v_ref = refs[idx]; idx += 1
    m_ref = None
    if mask_ndim:
        m_ref = refs[idx]; idx += 1
    wo_ref = refs[idx]; idx += 1
    out_ref = refs[idx]; idx += 1
    attn_ref = refs[idx]

    q = q_ref[0] * scale                 # bf16 [tq, d_model]; scale folded into Q (small tile)
    k = k_ref[0]                         # [Lk, d_model]
    v = v_ref[0]                         # [Lk, d_model]
    wo = wo_ref[...]                     # [d_model, d_model]
    mval2d = m_ref[...] if mask_ndim == 2 else None

    tq, d_model = out_ref.shape[1], out_ref.shape[2]
    out = jnp.zeros((tq, d_model), jnp.float32)

    for h in range(n_heads):             # static unroll over heads
        sl = slice(h * d_head, (h + 1) * d_head)
        # scores = q_h @ k_h^T : contract last dims, bf16 operands, f32 accumulation.
        scores = lax.dot_general(q[:, sl], k[:, sl], (((1,), (1,)), ((), ())),
                                 preferred_element_type=jnp.float32)
        if mask_ndim == 2:
            scores = scores + mval2d
        elif mask_ndim == 4:
            scores = scores + (m_ref[0, h] if mask_heads == n_heads else m_ref[0, 0])

        # numerically-stable softmax in f32; denominator via EUP reciprocal + 1 Newton step.
        mx = jnp.max(scores, axis=-1, keepdims=True)
        e = jnp.exp(scores - mx)
        s = jnp.sum(e, axis=-1, keepdims=True)
        r = pl.reciprocal(s, approx=True)
        r = r * (2.0 - s * r)
        attn_h = e * r                                       # [tq, Lk] f32

        attn_ref[0, h] = attn_h.astype(attn_ref.dtype)       # bf16 attn output (configurable)

        # Fold head straight into the output projection:
        #   out += (attn_h @ v_h) @ W_O[h*Dh:(h+1)*Dh, :]
        ctx_h = jnp.dot(attn_h.astype(v.dtype), v[:, sl],
                        preferred_element_type=jnp.float32)
        out = out + jnp.dot(ctx_h.astype(wo.dtype), wo[sl, :],
                            preferred_element_type=jnp.float32)

    out_ref[0] = out.astype(out_ref.dtype)


def attention_full(Q, K, V, mask, wo_t, n_heads, d_head, attn_dtype, out_dtype,
                   tile_q=None):
    B, Lq, D = Q.shape
    Lk = K.shape[1]
    tq = tile_q or _default_tile_q()
    if Lq % tq != 0:
        tq = Lq
    scale = 1.0 / math.sqrt(float(d_head))
    mask_ndim, mask_heads, mask_per_batch = _check_mask(mask, B, n_heads)

    kernel = functools.partial(_attn_full_kernel, n_heads=n_heads, d_head=d_head,
                               scale=scale, mask_ndim=mask_ndim, mask_heads=mask_heads)

    inputs = [Q, K, V]
    in_specs = [
        pl.BlockSpec((1, tq, D), lambda b, qi: (b, qi, 0)),
        pl.BlockSpec((1, Lk, D), lambda b, qi: (b, 0, 0)),
        pl.BlockSpec((1, Lk, D), lambda b, qi: (b, 0, 0)),
    ]
    if mask_ndim == 2:
        # shared mask: block index independent of batch -> stays resident across b.
        in_specs.append(pl.BlockSpec((tq, Lk), lambda b, qi: (qi, 0)))
        inputs.append(mask)
    elif mask_ndim == 4:
        if mask_per_batch:
            in_specs.append(pl.BlockSpec((1, mask_heads, tq, Lk),
                                         lambda b, qi: (b, 0, qi, 0)))
        else:
            in_specs.append(pl.BlockSpec((1, mask_heads, tq, Lk),
                                         lambda b, qi: (0, 0, qi, 0)))
        inputs.append(mask)
    in_specs.append(pl.BlockSpec((D, D), lambda b, qi: (0, 0)))   # resident W_O
    inputs.append(wo_t)

    out, attn = pl.pallas_call(
        kernel,
        out_shape=(jax.ShapeDtypeStruct((B, Lq, D), out_dtype),
                   jax.ShapeDtypeStruct((B, n_heads, Lq, Lk), attn_dtype)),
        grid=(B, Lq // tq),
        in_specs=in_specs,
        out_specs=(pl.BlockSpec((1, tq, D), lambda b, qi: (b, qi, 0)),
                   pl.BlockSpec((1, n_heads, tq, Lk), lambda b, qi: (b, 0, qi, 0))),
        compiler_params=_mosaic_params("parallel", "parallel"),
    )(*inputs)
    return out, attn


# ---------------------------------------------------------------------------
# Kernel 2b: flash-style attention + output projection (no attn matrix emitted).
# grid=(B, Lq-tiles, Lk-tiles), online softmax with VMEM-scratch accumulators.
# ---------------------------------------------------------------------------
def _attn_flash_kernel(*refs, n_heads, d_head, scale, mask_ndim, mask_heads):
    idx = 0
    q_ref = refs[idx]; idx += 1
    k_ref = refs[idx]; idx += 1
    v_ref = refs[idx]; idx += 1
    m_ref = None
    if mask_ndim:
        m_ref = refs[idx]; idx += 1
    wo_ref = refs[idx]; idx += 1
    out_ref = refs[idx]; idx += 1
    m_sc, l_sc, acc_sc = refs[idx], refs[idx + 1], refs[idx + 2]

    kv = pl.program_id(2)

    @pl.when(kv == 0)
    def _():
        m_sc[...] = jnp.full(m_sc.shape, -jnp.inf, dtype=m_sc.dtype)
        l_sc[...] = jnp.zeros(l_sc.shape, dtype=l_sc.dtype)
        acc_sc[...] = jnp.zeros(acc_sc.shape, dtype=acc_sc.dtype)

    q = q_ref[0] * scale                 # [tq, d_model] bf16
    k = k_ref[0]                         # [tk, d_model]
    v = v_ref[0]
    mval2d = m_ref[...] if mask_ndim == 2 else None

    for h in range(n_heads):             # static unroll over heads
        sl = slice(h * d_head, (h + 1) * d_head)
        s = lax.dot_general(q[:, sl], k[:, sl], (((1,), (1,)), ((), ())),
                            preferred_element_type=jnp.float32)     # [tq, tk] f32
        if mask_ndim == 2:
            s = s + mval2d
        elif mask_ndim == 4:
            s = s + (m_ref[0, h] if mask_heads == n_heads else m_ref[0, 0])

        m_prev = m_sc[h]                                             # [tq, 1]
        m_new = jnp.maximum(m_prev, jnp.max(s, axis=-1, keepdims=True))
        alpha = jnp.exp(m_prev - m_new)
        p = jnp.exp(s - m_new)
        l_sc[h] = alpha * l_sc[h] + jnp.sum(p, axis=-1, keepdims=True)
        acc_sc[h] = alpha * acc_sc[h] + jnp.dot(p.astype(v.dtype), v[:, sl],
                                                preferred_element_type=jnp.float32)
        m_sc[h] = m_new

    @pl.when(kv == pl.num_programs(2) - 1)
    def _():
        wo = wo_ref[...]                 # [d_model, d_model] bf16
        tq, d_model = out_ref.shape[1], out_ref.shape[2]
        out = jnp.zeros((tq, d_model), jnp.float32)
        for h in range(n_heads):
            sl = slice(h * d_head, (h + 1) * d_head)
            l_h = l_sc[h]
            r = pl.reciprocal(l_h, approx=True)
            r = r * (2.0 - l_h * r)
            ctx_h = (acc_sc[h] * r).astype(wo.dtype)                 # [tq, d_head]
            out = out + jnp.dot(ctx_h, wo[sl, :],
                                preferred_element_type=jnp.float32)
        out_ref[0] = out.astype(out_ref.dtype)


def attention_flash(Q, K, V, mask, wo_t, n_heads, d_head, out_dtype,
                    tile_q=None, tile_k=None):
    B, Lq, D = Q.shape
    Lk = K.shape[1]
    tq = tile_q or _default_tile_q()
    if Lq % tq != 0:
        tq = Lq
    tk = tile_k or _default_tile_k()
    if Lk % tk != 0:
        tk = Lk
    scale = 1.0 / math.sqrt(float(d_head))
    mask_ndim, mask_heads, mask_per_batch = _check_mask(mask, B, n_heads)

    kernel = functools.partial(_attn_flash_kernel, n_heads=n_heads, d_head=d_head,
                               scale=scale, mask_ndim=mask_ndim, mask_heads=mask_heads)

    inputs = [Q, K, V]
    in_specs = [
        pl.BlockSpec((1, tq, D), lambda b, qi, ki: (b, qi, 0)),
        pl.BlockSpec((1, tk, D), lambda b, qi, ki: (b, ki, 0)),
        pl.BlockSpec((1, tk, D), lambda b, qi, ki: (b, ki, 0)),
    ]
    if mask_ndim == 2:
        in_specs.append(pl.BlockSpec((tq, tk), lambda b, qi, ki: (qi, ki)))
        inputs.append(mask)
    elif mask_ndim == 4:
        if mask_per_batch:
            in_specs.append(pl.BlockSpec((1, mask_heads, tq, tk),
                                         lambda b, qi, ki: (b, 0, qi, ki)))
        else:
            in_specs.append(pl.BlockSpec((1, mask_heads, tq, tk),
                                         lambda b, qi, ki: (0, 0, qi, ki)))
        inputs.append(mask)
    in_specs.append(pl.BlockSpec((D, D), lambda b, qi, ki: (0, 0)))   # resident W_O
    inputs.append(wo_t)

    out = pl.pallas_call(
        kernel,
        out_shape=jax.ShapeDtypeStruct((B, Lq, D), out_dtype),
        grid=(B, Lq // tq, Lk // tk),                 # reduction (k) axis last
        in_specs=in_specs,
        out_specs=pl.BlockSpec((1, tq, D), lambda b, qi, ki: (b, qi, 0)),
        scratch_shapes=[pltpu.VMEM((n_heads, tq, 1), jnp.float32),        # running max
                        pltpu.VMEM((n_heads, tq, 1), jnp.float32),        # running sum
                        pltpu.VMEM((n_heads, tq, d_head), jnp.float32)],  # ctx accumulator
        compiler_params=_mosaic_params("parallel", "parallel", "arbitrary"),
    )(*inputs)
    return out


# ---------------------------------------------------------------------------
# MultiHeadAttention forward
# ---------------------------------------------------------------------------
def multi_head_attention(input_Q, input_K, input_V, mask, prepared, n_heads,
                         return_attn=True, attn_dtype=jnp.bfloat16):
    """Forward of the PyTorch MultiHeadAttention module.

    return_attn=True matches the module (returns (output, attn)).
    return_attn=False uses the flash-style path (no O(L^2) attn materialization).
    """
    d_model = prepared["wo_t"].shape[0]
    d_head = d_model // n_heads
    out_dtype = input_Q.dtype
    Lq, Lk = input_Q.shape[1], input_K.shape[1]

    if (input_Q is input_K) and (input_Q is input_V):
        # self-attention fast path: one input stream, one wide (N = 3*d_model) matmul
        Q, K, V = qkv_project_packed(input_Q, prepared["w_qkv_t"], d_model)
    elif Lq == Lk:
        # distinct inputs, same length: single fused pallas_call
        Q, K, V = qkv_project_fused(input_Q, input_K, input_V,
                                    prepared["wq_t"], prepared["wk_t"], prepared["wv_t"])
    else:
        # general fallback (rare: len_q != len_k)
        Q = linear_tiled(input_Q, prepared["wq_t"])
        K = linear_tiled(input_K, prepared["wk_t"])
        V = linear_tiled(input_V, prepared["wv_t"])

    if return_attn:
        out, attn = attention_full(Q, K, V, mask, prepared["wo_t"],
                                   n_heads, d_head, attn_dtype, out_dtype)
        return out, attn
    out = attention_flash(Q, K, V, mask, prepared["wo_t"], n_heads, d_head, out_dtype)
    return out, None


# ---------------------------------------------------------------------------
# Pure-JAX reference (mirrors the PyTorch forward) for validation
# ---------------------------------------------------------------------------
def reference_mha(input_Q, input_K, input_V, mask, params, n_heads):
    d_model = params["W_Q"].shape[0]
    d_head = d_model // n_heads
    B, Lq, _ = input_Q.shape
    Lk = input_K.shape[1]
    Q = (input_Q @ params["W_Q"].T).reshape(B, Lq, n_heads, d_head).transpose(0, 2, 1, 3)
    K = (input_K @ params["W_K"].T).reshape(B, Lk, n_heads, d_head).transpose(0, 2, 1, 3)
    V = (input_V @ params["W_V"].T).reshape(B, Lk, n_heads, d_head).transpose(0, 2, 1, 3)
    scores = jnp.einsum("bhqd,bhkd->bhqk", Q, K) / jnp.sqrt(jnp.float32(d_head))
    if mask is not None:
        scores = scores + mask
    attn = jax.nn.softmax(scores, axis=-1)
    ctx = jnp.einsum("bhqk,bhkd->bhqd", attn, V)
    ctx = ctx.transpose(0, 2, 1, 3).reshape(B, Lq, d_model)
    out = ctx @ params["fc"].T
    return out, attn


if __name__ == "__main__":
    d_model, n_heads, batch, seq = 32, 4, 2, 8

    key = jax.random.PRNGKey(0)
    ks = jax.random.split(key, 8)

    # PyTorch Linear weight shape: [out_features, in_features]
    params = {
        "W_Q": 0.02 * jax.random.normal(ks[0], (d_model, 2 * d_model), jnp.float32),
        "W_K": 0.02 * jax.random.normal(ks[1], (d_model, 2 * d_model), jnp.float32),
        "W_V": 0.02 * jax.random.normal(ks[2], (d_model, 2 * d_model), jnp.float32),
        "fc":  0.02 * jax.random.normal(ks[3], (d_model, d_model), jnp.float32),
    }
    prepared = prepare_mha_params(params)   # transposed + bf16 + packed, ONCE

    input_Q = jax.random.normal(ks[4], (batch, seq, 2 * d_model), jnp.float32)
    input_K = jax.random.normal(ks[5], (batch, seq, 2 * d_model), jnp.float32)
    input_V = jax.random.normal(ks[6], (batch, seq, 2 * d_model), jnp.float32)

    # shared additive causal mask [Lq, Lk] -> single resident block (no B*H broadcast)
    causal2d = jnp.triu(jnp.full((seq, seq), -1e9, jnp.float32), k=1)
    mask4d = jnp.broadcast_to(causal2d, (batch, n_heads, seq, seq))

    OUT_TOL = dict(atol=5e-3, rtol=3e-2)     # bf16 MXU operands, f32 accumulation
    ATTN_TOL = dict(atol=1e-2, rtol=1e-2)

    # --- path 1: distinct Q/K/V, module semantics (returns attn), shared 2-D mask ---
    out1, attn1 = multi_head_attention(input_Q, input_K, input_V, causal2d,
                                       prepared, n_heads, return_attn=True)
    jax.block_until_ready((out1, attn1))
    ref_out1, ref_attn1 = reference_mha(input_Q, input_K, input_V, causal2d, params, n_heads)
    assert out1.shape == (batch, seq, d_model)
    assert attn1.shape == (batch, n_heads, seq, seq)
    assert jnp.allclose(out1, ref_out1, **OUT_TOL)
    assert jnp.allclose(attn1.astype(jnp.float32), ref_attn1, **ATTN_TOL)

    # --- path 2: self-attention (packed QKV) + flash path (no attn materialized) ---
    out2, attn2 = multi_head_attention(input_Q, input_Q, input_Q, causal2d,
                                       prepared, n_heads, return_attn=False)
    jax.block_until_ready(out2)
    ref_out2, _ = reference_mha(input_Q, input_Q, input_Q, causal2d, params, n_heads)
    assert attn2 is None
    assert jnp.allclose(out2, ref_out2, **OUT_TOL)

    # --- path 3: full 4-D [B, H, Lq, Lk] mask (module-style), full kernel ---
    out3, attn3 = multi_head_attention(input_Q, input_K, input_V, mask4d,
                                       prepared, n_heads, return_attn=True)
    jax.block_until_ready((out3, attn3))
    assert jnp.allclose(out3, ref_out1, **OUT_TOL)
    assert jnp.allclose(attn3.astype(jnp.float32), ref_attn1, **ATTN_TOL)

    print("KERNEL_OK")
</pallas_src>

<mosaic_0001>
module attributes {stable_mosaic.version = 11 : i64} {
  func.func @_qkv_kernel(%arg0: i32, %arg1: memref<16x64xbf16, #tpu.memory_space<vmem>>, %arg2: memref<16x64xbf16, #tpu.memory_space<vmem>>, %arg3: memref<16x64xbf16, #tpu.memory_space<vmem>>, %arg4: memref<64x32xbf16, #tpu.memory_space<vmem>>, %arg5: memref<64x32xbf16, #tpu.memory_space<vmem>>, %arg6: memref<64x32xbf16, #tpu.memory_space<vmem>>, %arg7: memref<16x32xbf16, #tpu.memory_space<vmem>>, %arg8: memref<16x32xbf16, #tpu.memory_space<vmem>>, %arg9: memref<16x32xbf16, #tpu.memory_space<vmem>>) attributes {dimension_semantics = [#tpu.dimension_semantics<parallel>], iteration_bounds = array<i64: 1>, scalar_prefetch = 0 : i64, scratch_operands = 0 : i64, tpu.core_type = #tpu.core_type<tc>, window_params = [{transform_indices = @transform_0, window_bounds = array<i64: 16, 64>}, {transform_indices = @transform_1, window_bounds = array<i64: 16, 64>}, {transform_indices = @transform_2, window_bounds = array<i64: 16, 64>}, {pipeline_mode = #tpu.pipeline_mode<synchronous>, transform_indices = @transform_3, window_bounds = array<i64: 64, 32>}, {pipeline_mode = #tpu.pipeline_mode<synchronous>, transform_indices = @transform_4, window_bounds = array<i64: 64, 32>}, {pipeline_mode = #tpu.pipeline_mode<synchronous>, transform_indices = @transform_5, window_bounds = array<i64: 64, 32>}, {transform_indices = @transform_6, window_bounds = array<i64: 16, 32>}, {transform_indices = @transform_7, window_bounds = array<i64: 16, 32>}, {transform_indices = @transform_8, window_bounds = array<i64: 16, 32>}]} {
    %c0 = arith.constant 0 : index
    %c0_0 = arith.constant 0 : index
    %0 = vector.load %arg1[%c0, %c0_0] : memref<16x64xbf16, #tpu.memory_space<vmem>>, vector<16x64xbf16>
    %c0_1 = arith.constant 0 : index
    %c0_2 = arith.constant 0 : index
    %1 = vector.load %arg4[%c0_1, %c0_2] : memref<64x32xbf16, #tpu.memory_space<vmem>>, vector<64x32xbf16>
    %cst = arith.constant dense<0.000000e+00> : vector<16x32xf32>
    %2 = tpu.matmul %0, %1, %cst {dimension_numbers = #tpu.dot_dimension_numbers<[1], [0], [0], [1], [0, 0, 1, 1], [], []>} : vector<16x64xbf16>, vector<64x32xbf16>, vector<16x32xf32> -> vector<16x32xf32>
    %3 = arith.truncf %2 : vector<16x32xf32> to vector<16x32xbf16>
    %c0_3 = arith.constant 0 : index
    %c0_4 = arith.constant 0 : index
    %4 = vector.load %arg7[%c0_3, %c0_4] : memref<16x32xbf16, #tpu.memory_space<vmem>>, vector<16x32xbf16>
    tpu.vector_store %arg7[%c0_3, %c0_4], %3 {strides = array<i32>} : memref<16x32xbf16, #tpu.memory_space<vmem>>, vector<16x32xbf16>,
    %c0_5 = arith.constant 0 : index
    %c0_6 = arith.constant 0 : index
    %5 = vector.load %arg2[%c0_5, %c0_6] : memref<16x64xbf16, #tpu.memory_space<vmem>>, vector<16x64xbf16>
    %c0_7 = arith.constant 0 : index
    %c0_8 = arith.constant 0 : index
    %6 = vector.load %arg5[%c0_7, %c0_8] : memref<64x32xbf16, #tpu.memory_space<vmem>>, vector<64x32xbf16>
    %cst_9 = arith.constant dense<0.000000e+00> : vector<16x32xf32>
    %7 = tpu.matmul %5, %6, %cst_9 {dimension_numbers = #tpu.dot_dimension_numbers<[1], [0], [0], [1], [0, 0, 1, 1], [], []>} : vector<16x64xbf16>, vector<64x32xbf16>, vector<16x32xf32> -> vector<16x32xf32>
    %8 = arith.truncf %7 : vector<16x32xf32> to vector<16x32xbf16>
    %c0_10 = arith.constant 0 : index
    %c0_11 = arith.constant 0 : index
    %9 = vector.load %arg8[%c0_10, %c0_11] : memref<16x32xbf16, #tpu.memory_space<vmem>>, vector<16x32xbf16>
    tpu.vector_store %arg8[%c0_10, %c0_11], %8 {strides = array<i32>} : memref<16x32xbf16, #tpu.memory_space<vmem>>, vector<16x32xbf16>,
    %c0_12 = arith.constant 0 : index
    %c0_13 = arith.constant 0 : index
    %10 = vector.load %arg3[%c0_12, %c0_13] : memref<16x64xbf16, #tpu.memory_space<vmem>>, vector<16x64xbf16>
    %c0_14 = arith.constant 0 : index
    %c0_15 = arith.constant 0 : index
    %11 = vector.load %arg6[%c0_14, %c0_15] : memref<64x32xbf16, #tpu.memory_space<vmem>>, vector<64x32xbf16>
    %cst_16 = arith.constant dense<0.000000e+00> : vector<16x32xf32>
    %12 = tpu.matmul %10, %11, %cst_16 {dimension_numbers = #tpu.dot_dimension_numbers<[1], [0], [0], [1], [0, 0, 1, 1], [], []>} : vector<16x64xbf16>, vector<64x32xbf16>, vector<16x32xf32> -> vector<16x32xf32>
    %13 = arith.truncf %12 : vector<16x32xf32> to vector<16x32xbf16>
    %c0_17 = arith.constant 0 : index
    %c0_18 = arith.constant 0 : index
    %14 = vector.load %arg9[%c0_17, %c0_18] : memref<16x32xbf16, #tpu.memory_space<vmem>>, vector<16x32xbf16>
    tpu.vector_store %arg9[%c0_17, %c0_18], %13 {strides = array<i32>} : memref<16x32xbf16, #tpu.memory_space<vmem>>, vector<16x32xbf16>,
    return
  }
  func.func @transform_0(%arg0: i32) -> (i32, i32) {
    %c0_i32 = arith.constant 0 : i32
    %c0_i32_0 = arith.constant 0 : i32
    return %arg0, %c0_i32 : i32, i32
  }
  func.func @transform_1(%arg0: i32) -> (i32, i32) {
    %c0_i32 = arith.constant 0 : i32
    %c0_i32_0 = arith.constant 0 : i32
    return %arg0, %c0_i32 : i32, i32
  }
  func.func @transform_2(%arg0: i32) -> (i32, i32) {
    %c0_i32 = arith.constant 0 : i32
    %c0_i32_0 = arith.constant 0 : i32
    return %arg0, %c0_i32 : i32, i32
  }
  func.func @transform_3(%arg0: i32) -> (i32, i32) {
    %c0_i32 = arith.constant 0 : i32
    %c0_i32_0 = arith.constant 0 : i32
    %c0_i32_1 = arith.constant 0 : i32
    return %c0_i32, %c0_i32_0 : i32, i32
  }
  func.func @transform_4(%arg0: i32) -> (i32, i32) {
    %c0_i32 = arith.constant 0 : i32
    %c0_i32_0 = arith.constant 0 : i32
    %c0_i32_1 = arith.constant 0 : i32
    return %c0_i32, %c0_i32_0 : i32, i32
  }
  func.func @transform_5(%arg0: i32) -> (i32, i32) {
    %c0_i32 = arith.constant 0 : i32
    %c0_i32_0 = arith.constant 0 : i32
    %c0_i32_1 = arith.constant 0 : i32
    return %c0_i32, %c0_i32_0 : i32, i32
  }
  func.func @transform_6(%arg0: i32) -> (i32, i32) {
    %c0_i32 = arith.constant 0 : i32
    %c0_i32_0 = arith.constant 0 : i32
    return %arg0, %c0_i32 : i32, i32
  }
  func.func @transform_7(%arg0: i32) -> (i32, i32) {
    %c0_i32 = arith.constant 0 : i32
    %c0_i32_0 = arith.constant 0 : i32
    return %arg0, %c0_i32 : i32, i32
  }
  func.func @transform_8(%arg0: i32) -> (i32, i32) {
    %c0_i32 = arith.constant 0 : i32
    %c0_i32_0 = arith.constant 0 : i32
    return %arg0, %c0_i32 : i32, i32
  }
}

</mosaic_0001>

<bundles_post_ra>
// kernel: tpu_custom_call.1
= control target key start
LH: loop header
LB: loop body
LE: loop exit
PB: predicated region body
PF: predicated region fallthrough
CT: control target
= control target key end

     0   :  { %14 = vsyncpa [#allocation3], 0  ;;  %v530_v1 = vmov 0.0   ;;  %vm531_vm0 = vmmov 0   ;;  %vm68_vm1 = vcmask 523264   ;;  %s684_s0 = inlined_call_operand.vmem [shape: bf16[16,64], index: 0, kind: input, shape index: {}]   ;;  %s685_s1 = inlined_call_operand.vmem [shape: bf16[16,64], index: 1, kind: input, shape index: {}]   ;;  %s686_s2 = inlined_call_operand.vmem [shape: bf16[16,64], index: 2, kind: input, shape index: {}]   ;;  %s687_s3 = inlined_call_operand.vmem [shape: bf16[64,32], index: 3, kind: input, shape index: {}]   ;;  %s688_s4 = inlined_call_operand.vmem [shape: bf16[64,32], index: 4, kind: input, shape index: {}]   ;;  %s689_s5 = inlined_call_operand.vmem [shape: bf16[64,32], index: 5, kind: input, shape index: {}]   ;;  %s690_s6 = inlined_call_operand.hbm [shape: bf16[16,32], index: 6, kind: output, shape index: {0}]   ;;  %s691_s7 = inlined_call_operand.hbm [shape: bf16[16,32], index: 7, kind: output, shape index: {1}]   ;;  %s692_s8 = inlined_call_operand.hbm [shape: bf16[16,32], index: 8, kind: output, shape index: {2}]  }
   0x1   :  { %v445_v0 = vld [vmem:[%s687_s3] sm:$0xff]   ;;  %402 = vmatprep.subr.bf16.mxu0 %v530_v1  ;;  %414 = vmatprep.subr.bf16.mxu1 %v530_v1  ;;  %v446_v2 = vld [vmem:[%s687_s3 + $0x8] sm:$0xff]   ;;  %v447_v4 = vld [vmem:[%s687_s3 + $0x10] sm:$0xff]  }
   0x2   :  { %403 = vmatpush3.bf16.msra.mxu0 %v445_v0  ;;  %410 = vmatprep.mubr.msk.bf16.mxu0 %vm531_vm0, %v530_v1  ;;  %v449_v3 = vld [vmem:[%s688_s4] sm:$0xff]   ;;  %v451_v5 = vld [vmem:[%s688_s4 + $0x8] sm:$0xff]   ;;  %v448_v6 = vld [vmem:[%s687_s3 + $0x18] sm:$0xff]  }
   0x3   :  { %404 = vmatprep.subr.bf16.mxu0 %v530_v1  ;;  %422 = vmatprep.mubr.msk.bf16.mxu1 %vm531_vm0, %v530_v1  ;;  %v453_v7 = vld [vmem:[%s688_s4 + $0x10] sm:$0xff]   ;;  %v450_v8 = vld [vmem:[%s684_s0] sm:$0xff]   ;;  %v455_v10 = vld [vmem:[%s688_s4 + $0x18] sm:$0xff]  }
   0x4   :  { %415 = vmatpush3.bf16.msra.mxu1 %v449_v3  ;;  %v452_v9 = vld [vmem:[%s689_s5] sm:$0xff]  }
   0x5   :  { %416 = vmatprep.subr.bf16.mxu1 %v530_v1 }
   0x6   :  { %405 = vmatpush3.bf16.msra.mxu0 %v446_v2 }
   0x7   :  { %406 = vmatprep.subr.bf16.mxu0 %v530_v1 }
   0x8   :  { %417 = vmatpush3.bf16.msra.mxu1 %v451_v5 }
   0x9   :  { %418 = vmatprep.subr.bf16.mxu1 %v530_v1 }
   0xa   :  { %407 = vmatpush3.bf16.msra.mxu0 %v447_v4 }
   0xb   :  { %408 = vmatprep.subr.bf16.mxu0 %v530_v1 }
   0xc   :  { %419 = vmatpush3.bf16.msra.mxu1 %v453_v7 }
   0xd   :  { %420 = vmatprep.subr.bf16.mxu1 %v530_v1 }
   0xe   :  { %409 = vmatpush3.bf16.msra.mxu0 %v448_v6 }
   0xf   :  { %426 = vmatprep.subr.bf16.mxu0 %v530_v1 }
  0x10   :  { %15 = vsyncpa [#allocation5], 0  ;;  %v457_v11 = vld [vmem:[%s685_s1] sm:$0xff]   ;;  %v454_v12 = vld [vmem:[%s689_s5 + $0x8] sm:$0xff]   ;;  %421 = vmatpush3.bf16.msra.mxu1 %v455_v10  ;;  %vm121_vm2 = vcmask 257024   ;;  %s532_s9 = smov [#allocation2]  }
  0x11   :  { %411 = vmatmul.mubr.msk.bf16.vlgmr.msra.gmra.mrb[0].mxu0 %vm68_vm1, %v450_v8  ;;  %v456_v13 = vld [vmem:[%s689_s5 + $0x10] sm:$0xff]   ;;  %v458_v14 = vld [vmem:[%s689_s5 + $0x18] sm:$0xff]   ;;  %v459_v15 = vld [vmem:[%s686_s2] sm:$0xff]   ;;  %s315_s10 = sshll.u32 %s532_s9, 4  ;;  %s533_s5 = smov [#allocation4]   ;;  %s316_s10 = int_to_ptr.vmem [resolvable:$true] %s315_s10 }
  0x12   :  { %427 = vmatpush3.bf16.msra.mxu0 %v452_v9  ;;  %434 = vmatprep.mubr.msk.bf16.mxu0 %vm531_vm0, %v530_v1  ;;  %s327_s11 = sshll.u32 %s533_s5, 4  ;;  %s460_s2 = scalar_lea.vmem %s316_s10, 128  ;;  %s328_s11 = int_to_ptr.vmem [resolvable:$true] %s327_s11 }
  0x13   :  { %428 = vmatprep.subr.bf16.mxu0 %v530_v1  ;;  %423 = vmatmul.mubr.msk.bf16.vlgmr.msra.gmra.mrb[0].mxu1 %vm68_vm1, %v457_v11  ;;  %p461_p0 = scmp.ne.s32.totalorder %s316_s10, %s460_s2  ;;  %p465_p1 = scmp.lt.s32.totalorder %s316_s10, %s316_s10 }
  0x14   :  { %p466_p2 = scmp.lt.s32.totalorder %s460_s2, %s460_s2 }
  0x16   :  { %429 = vmatpush3.bf16.msra.mxu0 %v454_v12  ;;  %p467_p3 = por %p466_p2, %p465_p1 }
  0x17   :  { %430 = vmatprep.subr.bf16.mxu0 %v530_v1 }
  0x18   :  { %p468_p4 = pnand %p467_p3, %p461_p0 }
  0x1a   :  { %431 = vmatpush3.bf16.msra.mxu0 %v456_v13 }
  0x1b   :  { %432 = vmatprep.subr.bf16.mxu0 %v530_v1 }
  0x1e   :  { %433 = vmatpush3.bf16.msra.mxu0 %v458_v14 }
  0x21   :  { %435 = vmatmul.mubr.msk.bf16.vlgmr.msra.gmra.mrb[4].mxu0 %vm68_vm1, %v459_v15 }
  0xe4   :  { %v106_v16 = vpop.f32.mrb[0].mxu0 }
  0xe5   :  { %v381_v17 = vpack.c.bf16 %v106_v16, %v106_v16  ;;  %v412_v18 = vpop.f32.mrb[1].mxu0 }
  0xe6   :  { %v109_v19 = vpop.f32.mrb[2].mxu0  ;;  %v200_v22 = vpop.f32.mrb[0].mxu1 }
  0xe7   :  { %122 = vst.msk [vmem:[#allocation2] sm:$0xf] %vm121_vm2, %v381_v17  ;;  %v382_v20 = vpack.c.bf16 %v109_v19, %v109_v19  ;;  %v413_v21 = vpop.f32.mrb[3].mxu0  ;;  %v383_v23 = vpack.c.bf16 %v200_v22, %v200_v22  ;;  %v424_v24 = vpop.f32.mrb[1].mxu1 }
  0xe8   :  { %v203_v25 = vpop.f32.mrb[2].mxu1 }
  0xe9   :  { %123 = vst.msk [vmem:[#allocation2 + $0x4] sm:$0xf] %vm121_vm2, %v382_v20 }
  0xea   :  { %471 = shalt.err (!%p468_p4)
}
  0xeb   :  { %s472_s14 = scalar_lea.hbm %s690_s6, 128 }
  0xec   :  { %p473_p5 = scmp.ne.s32.totalorder %s690_s6, %s472_s14  ;;  %p476_p6 = scmp.lt.u32.totalorder %s472_s14, %s690_s6 }
  0xee   :  { %p478_p7 = pnand %p476_p6, %p473_p5 }
  0xf0   :  { %481 = shalt.err (!%p478_p7)
}
  0xf1   :  { %s534_s19 = smov 64   ;;  %s535_s20 = smov 4   ;;  %215 = vst.msk [vmem:[#allocation4] sm:$0xf] %vm121_vm2, %v383_v23  ;;  %v384_v26 = vpack.c.bf16 %v203_v25, %v203_v25  ;;  %v425_v27 = vpop.f32.mrb[3].mxu1 }
  0xf2   :  { %321 = dma.vmem_to_hbm [thread:$0]  %s316_s10, 128, %s690_s6, [#allocation3], %s534_s19, %s534_s19, %s535_s20  }
  0xf3   :  { %216 = vst.msk [vmem:[#allocation4 + $0x4] sm:$0xf] %vm121_vm2, %v384_v26  ;;  %s482_s3 = scalar_lea.vmem %s328_s11, 128  ;;  %p487_p9 = scmp.lt.s32.totalorder %s328_s11, %s328_s11 }
  0xf4   :  { %p483_p8 = scmp.ne.s32.totalorder %s328_s11, %s482_s3  ;;  %p488_p10 = scmp.lt.s32.totalorder %s482_s3, %s482_s3 }
  0xf6   :  { %p489_p11 = por %p488_p10, %p487_p9 }
  0xf8   :  { %p490_p12 = pnand %p489_p11, %p483_p8 }
  0xfa   :  { %493 = shalt.err (!%p490_p12)
}
  0xfb   :  { %s494_s25 = scalar_lea.hbm %s691_s7, 128 }
  0xfc   :  { %p495_p13 = scmp.ne.s32.totalorder %s691_s7, %s494_s25  ;;  %p498_p0 = scmp.lt.u32.totalorder %s494_s25, %s691_s7 }
  0xfe   :  { %p500_p1 = pnand %p498_p0, %p495_p13 }
 0x100   :  { %503 = shalt.err (!%p500_p1)
}
 0x101   :  { %333 = dma.vmem_to_hbm [thread:$0]  %s328_s11, 128, %s691_s7, [#allocation5], %s534_s19, %s534_s19, %s535_s20   ;;  %v293_v28 = vpop.f32.mrb[4].mxu0 }
 0x102   :  { %s536_s1 = smov [#allocation6]   ;;  %v385_v29 = vpack.c.bf16 %v293_v28, %v293_v28  ;;  %v436_v30 = vpop.f32.mrb[5].mxu0 }
 0x103   :  { %s339_s29 = sshll.u32 %s536_s1, 4  ;;  %v296_v31 = vpop.f32.mrb[6].mxu0  ;;  %s340_s29 = int_to_ptr.vmem [resolvable:$true] %s339_s29 }
 0x104   :  { %308 = vst.msk [vmem:[#allocation6] sm:$0xf] %vm121_vm2, %v385_v29  ;;  %v386_v32 = vpack.c.bf16 %v296_v31, %v296_v31  ;;  %v437_v33 = vpop.f32.mrb[7].mxu0  ;;  %s504_s30 = scalar_lea.vmem %s340_s29, 128  ;;  %p509_p3 = scmp.lt.s32.totalorder %s340_s29, %s340_s29 }
 0x105   :  { %p505_p2 = scmp.ne.s32.totalorder %s340_s29, %s504_s30  ;;  %p510_p4 = scmp.lt.s32.totalorder %s504_s30, %s504_s30 }
 0x106   :  { %309 = vst.msk [vmem:[#allocation6 + $0x4] sm:$0xf] %vm121_vm2, %v386_v32 }
 0x107   :  { %p511_p5 = por %p510_p4, %p509_p3 }
 0x109   :  { %p512_p6 = pnand %p511_p5, %p505_p2 }
 0x10b   :  { %515 = shalt.err (!%p512_p6)
}
 0x10c   :  { %s516_s10 = scalar_lea.hbm %s692_s8, 128 }
 0x10d   :  { %p517_p7 = scmp.ne.s32.totalorder %s692_s8, %s516_s10  ;;  %p520_p8 = scmp.lt.u32.totalorder %s516_s10, %s692_s8 }
 0x10f   :  { %p522_p9 = pnand %p520_p8, %p517_p7 }
 0x111   :  { %525 = shalt.err (!%p522_p9)
}
 0x112   :  { %345 = dma.vmem_to_hbm [thread:$0]  %s340_s29, 128, %s692_s8, [#allocation5], %s534_s19, %s534_s19, %s535_s20  }
 0x113   :  { %526 = dma.done.wait [#allocation3], 128  }
 0x114   :  { %527 = vsyncadd [#allocation3], 4294967168 }
 0x115   :  { %528 = dma.done.wait [#allocation5], 256  }
 0x116   :  { %529 = vsyncadd [#allocation5], 4294967040 }
 0x117   :  { %355 = vsyncpa [#allocation3], 1 }
 0x118   :  { %356 = vsyncpa [#allocation5], 1 }

</bundles_post_ra>
